<compile_context>
chip_gen: v7x
topology: tpu7x:2x2x1
jax: 0.10.0
libtpu: 0.0.40
codegen_flags: <defaults>
</compile_context>

<pallas_src>
import math

import jax
import jax.numpy as jnp
from jax.experimental import pallas as pl
from jax.experimental.pallas import tpu as pltpu


def _round_up(a: int, b: int) -> int:
    return (a + b - 1) // b * b


def _make_gh_kernel(sigma: float, delta: float, masked: bool):
    # Plain Python floats -> baked literals (NOT captured jax arrays).
    inv_s = 1.0 / (float(sigma) * math.sqrt(2.0))             # folds the 0.5
    coef = float(delta) / (float(sigma) * math.sqrt(2.0 * math.pi))

    def compute(x, c, m, hist_ref, dist_ref, acc_ref):
        # x: (TN, 1, TL)   c: (1, bins, 1)   m: (TN, 1, TL) or None
        # hist_ref: (TN, bins, 1)  dist_ref: (TN, bins, TL)  acc_ref: (TN, bins, 1)
        l = pl.program_id(1)

        @pl.when(l == 0)
        def _init():
            acc_ref[...] = jnp.zeros_like(acc_ref)

        # Pre-scale on the small tiles; only sub/square/neg/exp/mul run at
        # full (TN, bins, TL) width.
        xs = x * inv_s                                 # (TN, 1, TL)
        cs = c * inv_s                                 # (1, bins, 1)
        z = xs - cs                                    # (TN, bins, TL)
        t = jnp.exp(-(z * z))                          # Gaussian, EUP slot
        if masked:
            d = t * (m * coef)                         # coef folded into small tile
        else:
            d = t * coef
        dist_ref[...] = d                              # lane-dense store (TL % 128 == 0)
        acc_ref[...] += jnp.sum(d, axis=-1, keepdims=True)   # (TN, bins, 1)

        @pl.when(l == pl.num_programs(1) - 1)
        def _finalize():
            acc = acc_ref[...]
            total = jnp.sum(acc, axis=1, keepdims=True)       # (TN, 1, 1)
            hist_ref[...] = acc / total

    if masked:
        def kernel(x_ref, c_ref, m_ref, hist_ref, dist_ref, acc_ref):
            compute(x_ref[...], c_ref[...], m_ref[...], hist_ref, dist_ref, acc_ref)
    else:
        def kernel(x_ref, c_ref, hist_ref, dist_ref, acc_ref):
            compute(x_ref[...], c_ref[...], None, hist_ref, dist_ref, acc_ref)

    return kernel


def gaussian_histogram(x, *, bins, vmin, vmax, sigma, attention_mask=None,
                       block_rows=8, dist_block_bytes=4 * 1024 * 1024):
    """Pallas TPU implementation of GaussianHistogram.forward.

    Returns (hist, hist_dist): hist (N, bins) f32, hist_dist (N, bins, L) f32.
    """
    x = x.astype(jnp.float32)
    N, L = x.shape
    bins = int(bins)
    delta = float(vmax - vmin) / float(bins)
    masked = attention_mask is not None

    # ---- tile selection ----------------------------------------------------
    TN = int(block_rows)
    # L-tile: multiple of 128 (lane-dense dist stores), sized so one f32
    # (TN, bins, TL) dist block stays within dist_block_bytes.
    max_tl = max(128, (dist_block_bytes // (TN * bins * 4)) // 128 * 128)
    TL = min(_round_up(L, 128), max_tl)
    Npad = _round_up(N, TN)
    Lpad = _round_up(L, TL)

    # ---- pad inputs so every block is full-sized ---------------------------
    if masked:
        xp = jnp.pad(x, ((0, Npad - N), (0, Lpad - L)))
        mp = jnp.pad(attention_mask.astype(jnp.float32),
                     ((0, Npad - N), (0, Lpad - L)))
        mp3 = mp.reshape(Npad, 1, Lpad)
    else:
        # +inf padding -> exp(-inf) == 0, so padded columns contribute nothing
        # without needing an all-ones mask array / DMA stream.
        xp = jnp.pad(x, ((0, Npad - N), (0, Lpad - L)), constant_values=jnp.inf)
        mp3 = None
    xp3 = xp.reshape(Npad, 1, Lpad)

    # Bin centers, laid out (1, bins, 1) so they broadcast against (TN, 1, TL).
    centers = float(vmin) + delta * (jnp.arange(bins, dtype=jnp.float32) + 0.5)
    centers3 = centers.reshape(1, bins, 1)

    kernel = _make_gh_kernel(float(sigma), delta, masked)

    grid = (Npad // TN, Lpad // TL)
    in_specs = [
        pl.BlockSpec((TN, 1, TL), lambda i, l: (i, 0, l)),      # x tile
        pl.BlockSpec((1, bins, 1), lambda i, l: (0, 0, 0)),     # centers (shared)
    ]
    inputs = [xp3, centers3]
    if masked:
        in_specs.append(pl.BlockSpec((TN, 1, TL), lambda i, l: (i, 0, l)))
        inputs.append(mp3)

    out_specs = (
        pl.BlockSpec((TN, bins, 1), lambda i, l: (i, 0, 0)),    # hist (resident over l)
        pl.BlockSpec((TN, bins, TL), lambda i, l: (i, 0, l)),   # hist_dist tile
    )
    out_shape = (
        jax.ShapeDtypeStruct((Npad, bins, 1), jnp.float32),
        jax.ShapeDtypeStruct((Npad, bins, Lpad), jnp.float32),
    )

    # ---- scoped-VMEM budget for the chosen tiles (double-buffered blocks) ---
    f32 = 4
    dist_blk = TN * bins * TL * f32
    x_blk = TN * 8 * TL * f32                       # (TN,1,TL) pads sublanes to 8
    hist_blk = TN * _round_up(bins, 8) * 128 * f32  # (TN,bins,1) pads lanes to 128
    n_seq_inputs = 2 if masked else 1
    vmem_need = (2 * dist_blk + 2 * n_seq_inputs * x_blk + 2 * hist_blk
                 + hist_blk + (4 << 20))
    vmem_limit = int(max(vmem_need, 32 << 20))

    hist_p, dist_p = pl.pallas_call(
        kernel,
        out_shape=out_shape,
        grid_spec=pltpu.PrefetchScalarGridSpec(
            num_scalar_prefetch=0,
            grid=grid,
            in_specs=in_specs,
            out_specs=out_specs,
            scratch_shapes=[pltpu.VMEM((TN, bins, 1), jnp.float32)],
        ),
        compiler_params=pltpu.CompilerParams(
            dimension_semantics=("parallel", "arbitrary"),
            vmem_limit_bytes=vmem_limit,
        ),
    )(*inputs)

    hist = hist_p[:N, :, 0]            # (N, bins)
    hist_dist = dist_p[:N, :, :L]      # (N, bins, L)
    return hist, hist_dist


def _reference(x, *, bins, vmin, vmax, sigma, attention_mask=None):
    """Pure-JAX replica of the PyTorch forward, for validation."""
    delta = float(vmax - vmin) / float(bins)
    centers = float(vmin) + delta * (jnp.arange(bins, dtype=jnp.float32) + 0.5)
    d = x[:, None, :] - centers[None, :, None]                       # (N, bins, L)
    hist_dist = (jnp.exp(-0.5 * (d / sigma) ** 2)
                 / (sigma * jnp.sqrt(jnp.pi * 2.0)) * delta)
    if attention_mask is not None:
        hist_dist = hist_dist * attention_mask[:, None, :]
    hist = hist_dist.sum(axis=-1)
    hist = hist / jnp.sum(hist, axis=1, keepdims=True)
    return hist, hist_dist


if __name__ == "__main__":
    key = jax.random.PRNGKey(0)
    k1, k2 = jax.random.split(key)

    N, L = 2, 16
    BINS = 32
    VMIN, VMAX = -1.0, 1.0
    SIGMA = 0.01

    x = jax.random.uniform(k1, (N, L), dtype=jnp.float32,
                           minval=VMIN, maxval=VMAX)
    mask = (jax.random.uniform(k2, (N, L)) > 0.25).astype(jnp.float32)

    # Masked variant.
    hist, hist_dist = gaussian_histogram(
        x, bins=BINS, vmin=VMIN, vmax=VMAX, sigma=SIGMA, attention_mask=mask)
    hist = jax.block_until_ready(hist)
    hist_dist = jax.block_until_ready(hist_dist)

    ref_hist, ref_dist = _reference(
        x, bins=BINS, vmin=VMIN, vmax=VMAX, sigma=SIGMA, attention_mask=mask)

    assert hist.shape == (N, BINS)
    assert hist_dist.shape == (N, BINS, L)
    assert jnp.allclose(hist, ref_hist, atol=1e-5, rtol=1e-5)
    assert jnp.allclose(hist_dist, ref_dist, atol=1e-5, rtol=1e-5)

    # Unmasked variant (separate kernel: no mask DMA; +inf sequence padding).
    hist_u, dist_u = gaussian_histogram(
        x, bins=BINS, vmin=VMIN, vmax=VMAX, sigma=SIGMA, attention_mask=None)
    hist_u = jax.block_until_ready(hist_u)
    dist_u = jax.block_until_ready(dist_u)

    ref_hist_u, ref_dist_u = _reference(
        x, bins=BINS, vmin=VMIN, vmax=VMAX, sigma=SIGMA, attention_mask=None)

    assert jnp.allclose(hist_u, ref_hist_u, atol=1e-5, rtol=1e-5)
    assert jnp.allclose(dist_u, ref_dist_u, atol=1e-5, rtol=1e-5)

    print("KERNEL_OK")
</pallas_src>

<mosaic_0001>
module attributes {stable_mosaic.version = 11 : i64} {
  func.func @kernel(%arg0: i32, %arg1: i32, %arg2: memref<8x1x128xf32, #tpu.memory_space<vmem>>, %arg3: memref<1x32x1xf32, #tpu.memory_space<vmem>>, %arg4: memref<8x1x128xf32, #tpu.memory_space<vmem>>, %arg5: memref<8x32x1xf32, #tpu.memory_space<vmem>>, %arg6: memref<8x32x128xf32, #tpu.memory_space<vmem>>, %arg7: memref<8x32x1xf32, #tpu.memory_space<vmem>>) attributes {dimension_semantics = [#tpu.dimension_semantics<parallel>, #tpu.dimension_semantics<arbitrary>], iteration_bounds = array<i64: 1, 1>, scalar_prefetch = 0 : i64, scratch_operands = 1 : i64, tpu.core_type = #tpu.core_type<tc>, window_params = [{transform_indices = @transform_0, window_bounds = array<i64: 8, 1, 128>}, {pipeline_mode = #tpu.pipeline_mode<synchronous>, transform_indices = @transform_1, window_bounds = array<i64: 1, 32, 1>}, {transform_indices = @transform_2, window_bounds = array<i64: 8, 1, 128>}, {transform_indices = @transform_3, window_bounds = array<i64: 8, 32, 1>}, {transform_indices = @transform_4, window_bounds = array<i64: 8, 32, 128>}]} {
    %c0 = arith.constant 0 : index
    %c0_0 = arith.constant 0 : index
    %c0_1 = arith.constant 0 : index
    %0 = vector.load %arg2[%c0, %c0_0, %c0_1] : memref<8x1x128xf32, #tpu.memory_space<vmem>>, vector<8x1x128xf32>
    %c0_2 = arith.constant 0 : index
    %c0_3 = arith.constant 0 : index
    %c0_4 = arith.constant 0 : index
    %1 = vector.load %arg3[%c0_2, %c0_3, %c0_4] : memref<1x32x1xf32, #tpu.memory_space<vmem>>, vector<1x32x1xf32>
    %c0_5 = arith.constant 0 : index
    %c0_6 = arith.constant 0 : index
    %c0_7 = arith.constant 0 : index
    %2 = vector.load %arg4[%c0_5, %c0_6, %c0_7] : memref<8x1x128xf32, #tpu.memory_space<vmem>>, vector<8x1x128xf32>
    %c0_i32 = arith.constant 0 : i32
    %3 = arith.cmpi eq, %arg1, %c0_i32 : i32
    %4 = arith.extui %3 : i1 to i32
    %c0_i32_8 = arith.constant 0 : i32
    %5 = arith.cmpi ne, %4, %c0_i32_8 : i32
    scf.if %5 {
      %cst_24 = arith.constant 0.000000e+00 : f32
      %30 = vector.broadcast %cst_24 : f32 to vector<8x32x1xf32>
      %c0_25 = arith.constant 0 : index
      %c0_26 = arith.constant 0 : index
      %c0_27 = arith.constant 0 : index
      %31 = vector.load %arg7[%c0_25, %c0_26, %c0_27] : memref<8x32x1xf32, #tpu.memory_space<vmem>>, vector<8x32x1xf32>
      tpu.vector_store %arg7[%c0_25, %c0_26, %c0_27], %30 {strides = array<i32>} : memref<8x32x1xf32, #tpu.memory_space<vmem>>, vector<8x32x1xf32>,
    } else {
    }
    %cst = arith.constant 70.7106781 : f32
    %6 = vector.broadcast %cst : f32 to vector<8x1x128xf32>
    %7 = arith.mulf %0, %6 : vector<8x1x128xf32>
    %cst_9 = arith.constant 70.7106781 : f32
    %8 = vector.broadcast %cst_9 : f32 to vector<1x32x1xf32>
    %9 = arith.mulf %1, %8 : vector<1x32x1xf32>
    %10 = vector.broadcast %7 : vector<8x1x128xf32> to vector<8x32x128xf32>
    %11 = vector.broadcast %9 : vector<1x32x1xf32> to vector<8x32x128xf32>
    %12 = arith.subf %10, %11 : vector<8x32x128xf32>
    %13 = arith.mulf %12, %12 : vector<8x32x128xf32>
    %cst_10 = arith.constant 0.000000e+00 : f32
    %14 = vector.broadcast %cst_10 : f32 to vector<8x32x128xf32>
    %15 = arith.subf %14, %13 : vector<8x32x128xf32>
    %16 = math.exp %15 : vector<8x32x128xf32>
    %cst_11 = arith.constant 2.49338937 : f32
    %17 = vector.broadcast %cst_11 : f32 to vector<8x1x128xf32>
    %18 = arith.mulf %2, %17 : vector<8x1x128xf32>
    %19 = vector.broadcast %18 : vector<8x1x128xf32> to vector<8x32x128xf32>
    %20 = arith.mulf %16, %19 : vector<8x32x128xf32>
    %c0_12 = arith.constant 0 : index
    %c0_13 = arith.constant 0 : index
    %c0_14 = arith.constant 0 : index
    %21 = vector.load %arg6[%c0_12, %c0_13, %c0_14] : memref<8x32x128xf32, #tpu.memory_space<vmem>>, vector<8x32x128xf32>
    tpu.vector_store %arg6[%c0_12, %c0_13, %c0_14], %20 {strides = array<i32>} : memref<8x32x128xf32, #tpu.memory_space<vmem>>, vector<8x32x128xf32>,
    %c0_15 = arith.constant 0 : index
    %c0_16 = arith.constant 0 : index
    %c0_17 = arith.constant 0 : index
    %22 = vector.load %arg7[%c0_15, %c0_16, %c0_17] : memref<8x32x1xf32, #tpu.memory_space<vmem>>, vector<8x32x1xf32>
    %cst_18 = arith.constant dense<0.000000e+00> : vector<8x32xf32>
    %23 = vector.multi_reduction <add>, %20, %cst_18 [2] : vector<8x32x128xf32> to vector<8x32xf32>
    %24 = vector.shape_cast %23 : vector<8x32xf32> to vector<8x32x1xf32>
    %25 = arith.addf %22, %24 : vector<8x32x1xf32>
    %c0_19 = arith.constant 0 : index
    %c0_20 = arith.constant 0 : index
    %c0_21 = arith.constant 0 : index
    %26 = vector.load %arg7[%c0_19, %c0_20, %c0_21] : memref<8x32x1xf32, #tpu.memory_space<vmem>>, vector<8x32x1xf32>
    tpu.vector_store %arg7[%c0_19, %c0_20, %c0_21], %25 {strides = array<i32>} : memref<8x32x1xf32, #tpu.memory_space<vmem>>, vector<8x32x1xf32>,
    %c0_i32_22 = arith.constant 0 : i32
    %27 = arith.cmpi eq, %arg1, %c0_i32_22 : i32
    %28 = arith.extui %27 : i1 to i32
    %c0_i32_23 = arith.constant 0 : i32
    %29 = arith.cmpi ne, %28, %c0_i32_23 : i32
    scf.if %29 {
      %c0_24 = arith.constant 0 : index
      %c0_25 = arith.constant 0 : index
      %c0_26 = arith.constant 0 : index
      %30 = vector.load %arg7[%c0_24, %c0_25, %c0_26] : memref<8x32x1xf32, #tpu.memory_space<vmem>>, vector<8x32x1xf32>
      %cst_27 = arith.constant dense<0.000000e+00> : vector<8x1xf32>
      %31 = vector.multi_reduction <add>, %30, %cst_27 [1] : vector<8x32x1xf32> to vector<8x1xf32>
      %32 = vector.shape_cast %31 : vector<8x1xf32> to vector<8x1x1xf32>
      %33 = vector.broadcast %32 : vector<8x1x1xf32> to vector<8x32x1xf32>
      %34 = arith.divf %30, %33 : vector<8x32x1xf32>
      %c0_28 = arith.constant 0 : index
      %c0_29 = arith.constant 0 : index
      %c0_30 = arith.constant 0 : index
      %35 = vector.load %arg5[%c0_28, %c0_29, %c0_30] : memref<8x32x1xf32, #tpu.memory_space<vmem>>, vector<8x32x1xf32>
      tpu.vector_store %arg5[%c0_28, %c0_29, %c0_30], %34 {strides = array<i32>} : memref<8x32x1xf32, #tpu.memory_space<vmem>>, vector<8x32x1xf32>,
    } else {
    }
    return
  }
  func.func @transform_0(%arg0: i32, %arg1: i32) -> (i32, i32, i32) {
    %c0_i32 = arith.constant 0 : i32
    %c0_i32_0 = arith.constant 0 : i32
    return %arg0, %c0_i32, %arg1 : i32, i32, i32
  }
  func.func @transform_1(%arg0: i32, %arg1: i32) -> (i32, i32, i32) {
    %c0_i32 = arith.constant 0 : i32
    %c0_i32_0 = arith.constant 0 : i32
    %c0_i32_1 = arith.constant 0 : i32
    %c0_i32_2 = arith.constant 0 : i32
    return %c0_i32, %c0_i32_0, %c0_i32_1 : i32, i32, i32
  }
  func.func @transform_2(%arg0: i32, %arg1: i32) -> (i32, i32, i32) {
    %c0_i32 = arith.constant 0 : i32
    %c0_i32_0 = arith.constant 0 : i32
    return %arg0, %c0_i32, %arg1 : i32, i32, i32
  }
  func.func @transform_3(%arg0: i32, %arg1: i32) -> (i32, i32, i32) {
    %c0_i32 = arith.constant 0 : i32
    %c0_i32_0 = arith.constant 0 : i32
    %c0_i32_1 = arith.constant 0 : i32
    return %arg0, %c0_i32, %c0_i32_0 : i32, i32, i32
  }
  func.func @transform_4(%arg0: i32, %arg1: i32) -> (i32, i32, i32) {
    %c0_i32 = arith.constant 0 : i32
    %c0_i32_0 = arith.constant 0 : i32
    return %arg0, %c0_i32, %arg1 : i32, i32, i32
  }
}

</mosaic_0001>

<bundles_post_ra>
// kernel: tpu_custom_call.1
= control target key start
LH: loop header
LB: loop body
LE: loop exit
PB: predicated region body
PF: predicated region fallthrough
CT: control target
= control target key end

     0   :  { %v937_v3 = vmov 0   ;;  %s1555_s0 = inlined_call_operand.vmem [shape: f32[8,1,128], index: 0, kind: input, shape index: {}]   ;;  %s1556_s1 = inlined_call_operand.vmem [shape: f32[1,32,1], index: 1, kind: input, shape index: {}]   ;;  %s1557_s2 = inlined_call_operand.vmem [shape: f32[8,1,128], index: 2, kind: input, shape index: {}]   ;;  %s1558_s3 = inlined_call_operand.vmem [shape: f32[8,32,1], index: 3, kind: output, shape index: {0}]   ;;  %s1559_s4 = inlined_call_operand.hbm [shape: f32[8,32,128], index: 4, kind: output, shape index: {1}]  }
   0x1   :  { %v25_v0 = vld [vmem:[%s1556_s1] sm:$0xff]  ;;  %v26_v1 = vld [vmem:[%s1556_s1 + $0x8] sm:$0xff]  ;;  %v27_v2 = vld [vmem:[%s1556_s1 + $0x10] sm:$0xff]  ;;  %831 = vset.pattern.permute.xlu0 %v937_v3  ;;  %832 = vset.pattern.permute.xlu1 %v937_v3 }
   0x2   :  { %v82_v4 = vmul.f32 70.71068, %v25_v0  ;;  %v84_v5 = vmul.f32 70.71068, %v27_v2  ;;  %v28_v6 = vld [vmem:[%s1556_s1 + $0x18] sm:$0xff] }
   0x3   :  { %v83_v7 = vmul.f32 70.71068, %v26_v1  ;;  %v85_v8 = vmul.f32 70.71068, %v28_v6 }
   0x4   :  { %136 = vperm.xlu0 %831, %v82_v4   ;;  %146 = vperm.xlu1 %832, %v84_v5  }
   0x8   :  { %141 = vperm.xlu0 %831, %v83_v7   ;;  %151 = vperm.xlu1 %832, %v85_v8  }
   0x9   :  { %10 = vsyncpa [#allocation4], 0  ;;  %vm41_vm0 = vcmask 7168   ;;  %v938_v9 = vmov 0.0   ;;  %v94_v10 = vlaneseq  ;;  %v17_v11 = vld [vmem:[%s1555_s0] sm:$0x1] }
   0xa   :  { %42 = vst.msk [vmem:[#allocation2] sm:$0xff] %vm41_vm0, %v938_v9  ;;  %43 = vst.msk [vmem:[#allocation2 + $0x8] sm:$0xff] %vm41_vm0, %v938_v9  ;;  %v18_v13 = vld [vmem:[%s1555_s0 + $0x1] sm:$0x1]  ;;  %v19_v14 = vld [vmem:[%s1555_s0 + $0x2] sm:$0x1] }
   0xb   :  { %44 = vst.msk [vmem:[#allocation2 + $0x10] sm:$0xff] %vm41_vm0, %v938_v9  ;;  %45 = vst.msk [vmem:[#allocation2 + $0x18] sm:$0xff] %vm41_vm0, %v938_v9  ;;  %v95_v12 = vshrl.u32 %v94_v10, 7  ;;  %v20_v15 = vld [vmem:[%s1555_s0 + $0x3] sm:$0x1] }
   0xc   :  { %46 = vst.msk [vmem:[#allocation2 + $0x20] sm:$0xff] %vm41_vm0, %v938_v9  ;;  %47 = vst.msk [vmem:[#allocation2 + $0x28] sm:$0xff] %vm41_vm0, %v938_v9  ;;  %v21_v16 = vld [vmem:[%s1555_s0 + $0x4] sm:$0x1]  ;;  %v22_v17 = vld [vmem:[%s1555_s0 + $0x5] sm:$0x1] }
   0xd   :  { %48 = vst.msk [vmem:[#allocation2 + $0x30] sm:$0xff] %vm41_vm0, %v938_v9  ;;  %49 = vst.msk [vmem:[#allocation2 + $0x38] sm:$0xff] %vm41_vm0, %v938_v9  ;;  %v74_v18 = vmul.f32 70.71068, %v17_v11  ;;  %v75_v19 = vmul.f32 70.71068, %v18_v13 }
   0xe   :  { %50 = vst.msk [vmem:[#allocation2 + $0x40] sm:$0xff] %vm41_vm0, %v938_v9  ;;  %51 = vst.msk [vmem:[#allocation2 + $0x48] sm:$0xff] %vm41_vm0, %v938_v9  ;;  %v23_v20 = vld [vmem:[%s1555_s0 + $0x6] sm:$0x1]  ;;  %v96_v21 = vsub.s32 0, %v95_v12 }
   0xf   :  { %52 = vst.msk [vmem:[#allocation2 + $0x50] sm:$0xff] %vm41_vm0, %v938_v9  ;;  %53 = vst.msk [vmem:[#allocation2 + $0x58] sm:$0xff] %vm41_vm0, %v938_v9  ;;  %v76_v22 = vmul.f32 70.71068, %v19_v14  ;;  %v77_v23 = vmul.f32 70.71068, %v20_v15 }
  0x10   :  { %54 = vst.msk [vmem:[#allocation2 + $0x60] sm:$0xff] %vm41_vm0, %v938_v9  ;;  %55 = vst.msk [vmem:[#allocation2 + $0x68] sm:$0xff] %vm41_vm0, %v938_v9  ;;  %v29_v24 = vld [vmem:[%s1557_s2] sm:$0x1]  ;;  %v78_v25 = vmul.f32 70.71068, %v21_v16  ;;  %v1059_v45 = vrot.slane %v74_v18, %v96_v21  ;;  %v1061_v46 = vrot.slane %v75_v19, %v96_v21 }
  0x11   :  { %56 = vst.msk [vmem:[#allocation2 + $0x70] sm:$0xff] %vm41_vm0, %v938_v9  ;;  %57 = vst.msk [vmem:[#allocation2 + $0x78] sm:$0xff] %vm41_vm0, %v938_v9  ;;  %v79_v26 = vmul.f32 70.71068, %v22_v17  ;;  %v30_v27 = vld [vmem:[%s1557_s2 + $0x1] sm:$0x1]  ;;  %v1063_v47 = vrot.slane %v76_v22, %v96_v21  ;;  %v1065_v48 = vrot.slane %v77_v23, %v96_v21 }
  0x12   :  { %58 = vst.msk [vmem:[#allocation2 + $0x80] sm:$0xff] %vm41_vm0, %v938_v9  ;;  %59 = vst.msk [vmem:[#allocation2 + $0x88] sm:$0xff] %vm41_vm0, %v938_v9  ;;  %v80_v28 = vmul.f32 70.71068, %v23_v20  ;;  %v24_v29 = vld [vmem:[%s1555_s0 + $0x7] sm:$0x1]  ;;  %v1067_v49 = vrot.slane %v78_v25, %v96_v21 }
  0x13   :  { %60 = vst.msk [vmem:[#allocation2 + $0x90] sm:$0xff] %vm41_vm0, %v938_v9  ;;  %61 = vst.msk [vmem:[#allocation2 + $0x98] sm:$0xff] %vm41_vm0, %v938_v9  ;;  %v31_v30 = vld [vmem:[%s1557_s2 + $0x2] sm:$0x1]  ;;  %v32_v31 = vld [vmem:[%s1557_s2 + $0x3] sm:$0x1]  ;;  %v1069_v50 = vrot.slane %v79_v26, %v96_v21 }
  0x14   :  { %62 = vst.msk [vmem:[#allocation2 + $0xa0] sm:$0xff] %vm41_vm0, %v938_v9  ;;  %63 = vst.msk [vmem:[#allocation2 + $0xa8] sm:$0xff] %vm41_vm0, %v938_v9  ;;  %v33_v32 = vld [vmem:[%s1557_s2 + $0x4] sm:$0x1]  ;;  %v34_v33 = vld [vmem:[%s1557_s2 + $0x5] sm:$0x1]  ;;  %v1071_v51 = vrot.slane %v80_v28, %v96_v21 }
  0x15   :  { %64 = vst.msk [vmem:[#allocation2 + $0xb0] sm:$0xff] %vm41_vm0, %v938_v9  ;;  %65 = vst.msk [vmem:[#allocation2 + $0xb8] sm:$0xff] %vm41_vm0, %v938_v9  ;;  %v35_v34 = vld [vmem:[%s1557_s2 + $0x6] sm:$0x1]  ;;  %v36_v35 = vld [vmem:[%s1557_s2 + $0x7] sm:$0x1] }
  0x16   :  { %66 = vst.msk [vmem:[#allocation2 + $0xc0] sm:$0xff] %vm41_vm0, %v938_v9  ;;  %67 = vst.msk [vmem:[#allocation2 + $0xc8] sm:$0xff] %vm41_vm0, %v938_v9  ;;  %v314_v36 = vmul.f32 2.4933894, %v29_v24  ;;  %v315_v37 = vmul.f32 2.4933894, %v30_v27 }
  0x17   :  { %68 = vst.msk [vmem:[#allocation2 + $0xd0] sm:$0xff] %vm41_vm0, %v938_v9  ;;  %69 = vst.msk [vmem:[#allocation2 + $0xd8] sm:$0xff] %vm41_vm0, %v938_v9  ;;  %v81_v38 = vmul.f32 70.71068, %v24_v29  ;;  %v316_v39 = vmul.f32 2.4933894, %v31_v30 }
  0x18   :  { %70 = vst.msk [vmem:[#allocation2 + $0xe0] sm:$0xff] %vm41_vm0, %v938_v9  ;;  %71 = vst.msk [vmem:[#allocation2 + $0xe8] sm:$0xff] %vm41_vm0, %v938_v9  ;;  %v317_v40 = vmul.f32 2.4933894, %v32_v31  ;;  %v318_v41 = vmul.f32 2.4933894, %v33_v32  ;;  %v1075_v53 = vrot.slane %v314_v36, %v96_v21  ;;  %v1077_v54 = vrot.slane %v315_v37, %v96_v21 }
  0x19   :  { %72 = vst.msk [vmem:[#allocation2 + $0xf0] sm:$0xff] %vm41_vm0, %v938_v9  ;;  %73 = vst.msk [vmem:[#allocation2 + $0xf8] sm:$0xff] %vm41_vm0, %v938_v9  ;;  %v319_v42 = vmul.f32 2.4933894, %v34_v33  ;;  %v320_v43 = vmul.f32 2.4933894, %v35_v34  ;;  %v1073_v52 = vrot.slane %v81_v38, %v96_v21  ;;  %v1079_v55 = vrot.slane %v316_v39, %v96_v21 }
  0x1a   :  { %v321_v44 = vmul.f32 2.4933894, %v36_v35  ;;  %v1081_v56 = vrot.slane %v317_v40, %v96_v21  ;;  %v1083_v58 = vrot.slane %v318_v41, %v96_v21  ;;  %s939_s2 = smov [#allocation3]  }
  0x1b   :  { %v1085_v59 = vrot.slane %v319_v42, %v96_v21  ;;  %v1087_v60 = vrot.slane %v320_v43, %v96_v21  ;;  %s813_s26 = sshll.u32 %s939_s2, 4  ;;  %s814_s26 = int_to_ptr.vmem [resolvable:$true] %s813_s26 }
  0x1c   :  { %v1089_v61 = vrot.slane %v321_v44, %v96_v21  ;;  %s913_s27 = scalar_lea.vmem %s814_s26, 4096  ;;  %p918_p1 = scmp.lt.s32.totalorder %s814_s26, %s814_s26 }
  0x1d   :  { %p914_p0 = scmp.ne.s32.totalorder %s814_s26, %s913_s27  ;;  %p919_p2 = scmp.lt.s32.totalorder %s913_s27, %s913_s27 }
  0x1f   :  { %p920_p3 = por %p919_p2, %p918_p1 }
  0x21   :  { %p921_p4 = pnand %p920_p3, %p914_p0 }
  0x83   :  { %v137_v57 = vpop.permute.xlu0 %136 }
  0x84   :  { %v154_v62 = vsub.f32 %v1059_v45, %v137_v57  ;;  %v158_v63 = vsub.f32 %v1061_v46, %v137_v57  ;;  %v162_v0 = vsub.f32 %v1063_v47, %v137_v57  ;;  %v166_v1 = vsub.f32 %v1065_v48, %v137_v57 }
  0x85   :  { %v170_v2 = vsub.f32 %v1067_v49, %v137_v57  ;;  %v174_v3 = vsub.f32 %v1069_v50, %v137_v57  ;;  %v178_v4 = vsub.f32 %v1071_v51, %v137_v57  ;;  %v182_v5 = vsub.f32 %v1073_v52, %v137_v57 }
  0x86   :  { %v186_v6 = vmul.f32 %v154_v62, %v154_v62  ;;  %v190_v7 = vmul.f32 %v158_v63, %v158_v63  ;;  %v194_v8 = vmul.f32 %v162_v0, %v162_v0  ;;  %v198_v9 = vmul.f32 %v166_v1, %v166_v1  ;;  %v1105_v62 = vpop.permute.xlu1 %146 }
  0x87   :  { %v142_v10 = vpop.permute.xlu0 %141  ;;  %v202_v11 = vmul.f32 %v170_v2, %v170_v2  ;;  %v206_v12 = vmul.f32 %v174_v3, %v174_v3  ;;  %v210_v13 = vmul.f32 %v178_v4, %v178_v4  ;;  %v214_v14 = vmul.f32 %v182_v5, %v182_v5 }
  0x88   :  { %v218_v15 = vsub.f32 0.0, %v186_v6  ;;  %v155_v16 = vsub.f32 %v1059_v45, %v142_v10  ;;  %v222_v17 = vsub.f32 0.0, %v190_v7  ;;  %v226_v18 = vsub.f32 0.0, %v194_v8 }
  0x89   :  { %v159_v19 = vsub.f32 %v1061_v46, %v142_v10  ;;  %v230_v20 = vsub.f32 0.0, %v198_v9  ;;  %v163_v21 = vsub.f32 %v1063_v47, %v142_v10  ;;  %v234_v22 = vsub.f32 0.0, %v202_v11 }
  0x8a   :  { %v250_v23 = vmul.f32 1.442695, %v218_v15  ;;  %v187_v24 = vmul.f32 %v155_v16, %v155_v16  ;;  %v258_v25 = vmul.f32 1.442695, %v222_v17  ;;  %v266_v26 = vmul.f32 1.442695, %v226_v18 }
  0x8b   :  { %v191_v27 = vmul.f32 %v159_v19, %v159_v19  ;;  %v274_v28 = vmul.f32 1.442695, %v230_v20  ;;  %v195_v29 = vmul.f32 %v163_v21, %v163_v21  ;;  %v282_v30 = vmul.f32 1.442695, %v234_v22 }
  0x8c   :  { %833 = vpow2.f32 %v250_v23  ;;  %v219_v31 = vsub.f32 0.0, %v187_v24  ;;  %v167_v32 = vsub.f32 %v1065_v48, %v142_v10  ;;  %v238_v33 = vsub.f32 0.0, %v206_v12 }
  0x8d   :  { %835 = vpow2.f32 %v258_v25  ;;  %v223_v34 = vsub.f32 0.0, %v191_v27  ;;  %v227_v35 = vsub.f32 0.0, %v195_v29  ;;  %v171_v36 = vsub.f32 %v1067_v49, %v142_v10 }
  0x8e   :  { %v252_v37 = vmul.f32 1.442695, %v219_v31  ;;  %837 = vpow2.f32 %v266_v26  ;;  %v199_v38 = vmul.f32 %v167_v32, %v167_v32  ;;  %v290_v39 = vmul.f32 1.442695, %v238_v33 }
  0x8f   :  { %v260_v40 = vmul.f32 1.442695, %v223_v34  ;;  %839 = vpow2.f32 %v274_v28  ;;  %v268_v41 = vmul.f32 1.442695, %v227_v35  ;;  %v203_v42 = vmul.f32 %v171_v36, %v171_v36 }
  0x90   :  { %841 = vpow2.f32 %v252_v37  ;;  %v231_v43 = vsub.f32 0.0, %v199_v38  ;;  %v242_v44 = vsub.f32 0.0, %v210_v13  ;;  %v175_v57 = vsub.f32 %v1069_v50, %v142_v10 }
  0x91   :  { %843 = vpow2.f32 %v260_v40  ;;  %v235_v63 = vsub.f32 0.0, %v203_v42  ;;  %v246_v0 = vsub.f32 0.0, %v214_v14  ;;  %v179_v1 = vsub.f32 %v1071_v51, %v142_v10 }
  0x92   :  { %845 = vpow2.f32 %v268_v41  ;;  %v276_v2 = vmul.f32 1.442695, %v231_v43  ;;  %v298_v3 = vmul.f32 1.442695, %v242_v44  ;;  %v207_v4 = vmul.f32 %v175_v57, %v175_v57  ;;  %v1131_v57 = vpop.permute.xlu1 %151 }
  0x93   :  { %847 = vpow2.f32 %v282_v30  ;;  %v284_v5 = vmul.f32 1.442695, %v235_v63  ;;  %v306_v6 = vmul.f32 1.442695, %v246_v0  ;;  %v211_v7 = vmul.f32 %v179_v1, %v179_v1 }
  0x94   :  { %849 = vpow2.f32 %v276_v2  ;;  %v239_v8 = vsub.f32 0.0, %v207_v4  ;;  %v156_v9 = vsub.f32 %v1059_v45, %v1105_v62  ;;  %v183_v11 = vsub.f32 %v1073_v52, %v142_v10 }
  0x95   :  { %851 = vpow2.f32 %v290_v39  ;;  %v243_v12 = vsub.f32 0.0, %v211_v7  ;;  %v164_v13 = vsub.f32 %v1063_v47, %v1105_v62  ;;  %v160_v14 = vsub.f32 %v1061_v46, %v1105_v62 }
  0x96   :  { %v834_v15 = vpop.eup %833  ;;  %853 = vpow2.f32 %v284_v5  ;;  %v292_v16 = vmul.f32 1.442695, %v239_v8  ;;  %v188_v17 = vmul.f32 %v156_v9, %v156_v9  ;;  %v215_v18 = vmul.f32 %v183_v11, %v183_v11 }
  0x97   :  { %v836_v19 = vpop.eup %835  ;;  %v370_v20 = vmul.f32 %v834_v15, %v1075_v53  ;;  %855 = vpow2.f32 %v298_v3  ;;  %v300_v21 = vmul.f32 1.442695, %v243_v12  ;;  %v196_v22 = vmul.f32 %v164_v13, %v164_v13 }
  0x98   :  { %v838_v10 = vpop.eup %837  ;;  %v374_v23 = vmul.f32 %v836_v19, %v1077_v54  ;;  %857 = vpow2.f32 %v292_v16  ;;  %v220_v24 = vsub.f32 0.0, %v188_v17  ;;  %v247_v25 = vsub.f32 0.0, %v215_v18 }
  0x99   :  { %v840_v26 = vpop.eup %839  ;;  %466 = vadd.xlane.f32.xlu0 %v370_v20  ;;  %402 = vst [vmem:[#allocation3] sm:$0xff] %v370_v20  ;;  %v378_v27 = vmul.f32 %v838_v10, %v1079_v55  ;;  %859 = vpow2.f32 %v306_v6  ;;  %v228_v28 = vsub.f32 0.0, %v196_v22  ;;  %v192_v29 = vmul.f32 %v160_v14, %v160_v14 }
  0x9a   :  { %v842_v30 = vpop.eup %841  ;;  %406 = vst [vmem:[#allocation3 + $0x20] sm:$0xff] %v374_v23  ;;  %v1119_v31 = vmul.f32 %v840_v26, %v1081_v56  ;;  %861 = vpow2.f32 %v300_v21  ;;  %v254_v32 = vmul.f32 1.442695, %v220_v24  ;;  %v308_v33 = vmul.f32 1.442695, %v247_v25 }
  0x9b   :  { %v844_v34 = vpop.eup %843  ;;  %v371_v35 = vmul.f32 %v842_v30, %v1075_v53  ;;  %410 = vst [vmem:[#allocation3 + $0x40] sm:$0xff] %v378_v27  ;;  %v270_v36 = vmul.f32 1.442695, %v228_v28  ;;  %v224_v37 = vsub.f32 0.0, %v192_v29  ;;  %v172_v38 = vsub.f32 %v1067_v49, %v1105_v62 }
  0x9c   :  { %v846_v39 = vpop.eup %845  ;;  %v375_v40 = vmul.f32 %v844_v34, %v1077_v54  ;;  %414 = vst [vmem:[#allocation3 + $0x60] sm:$0xff] %v1119_v31  ;;  %863 = vpow2.f32 %v254_v32  ;;  %v168_v41 = vsub.f32 %v1065_v48, %v1105_v62  ;;  %v180_v42 = vsub.f32 %v1071_v51, %v1105_v62 }
  0x9d   :  { %v848_v43 = vpop.eup %847  ;;  %468 = vadd.xlane.f32.xlu1 %v371_v35  ;;  %403 = vst [vmem:[#allocation3 + $0x8] sm:$0xff] %v371_v35  ;;  %474 = vadd.xlane.f32.xlu0 %v374_v23  ;;  %v379_v44 = vmul.f32 %v846_v39, %v1079_v55  ;;  %865 = vpow2.f32 %v308_v33  ;;  %v262_v63 = vmul.f32 1.442695, %v224_v37  ;;  %v204_v0 = vmul.f32 %v172_v38, %v172_v38 }
  0x9e   :  { %v850_v1 = vpop.eup %849  ;;  %407 = vst [vmem:[#allocation3 + $0x28] sm:$0xff] %v375_v40  ;;  %v1134_v2 = vmul.f32 %v848_v43, %v1083_v58  ;;  %867 = vpow2.f32 %v270_v36  ;;  %v200_v3 = vmul.f32 %v168_v41, %v168_v41  ;;  %v212_v4 = vmul.f32 %v180_v42, %v180_v42 }
  0x9f   :  { %v852_v5 = vpop.eup %851  ;;  %411 = vst [vmem:[#allocation3 + $0x48] sm:$0xff] %v379_v44  ;;  %v383_v6 = vmul.f32 %v850_v1, %v1081_v56  ;;  %869 = vpow2.f32 %v262_v63  ;;  %v236_v7 = vsub.f32 0.0, %v204_v0  ;;  %v176_v8 = vsub.f32 %v1069_v50, %v1105_v62 }
  0xa0   :  { %v854_v9 = vpop.eup %853  ;;  %418 = vst [vmem:[#allocation3 + $0x80] sm:$0xff] %v1134_v2  ;;  %v1141_v11 = vmul.f32 %v852_v5, %v1085_v59  ;;  %v232_v12 = vsub.f32 0.0, %v200_v3  ;;  %v244_v13 = vsub.f32 0.0, %v212_v4  ;;  %v157_v14 = vsub.f32 %v1059_v45, %v1131_v57 }
  0xa1   :  { %v856_v15 = vpop.eup %855  ;;  %482 = vadd.xlane.f32.xlu1 %v378_v27  ;;  %476 = vadd.xlane.f32.xlu0 %v375_v40  ;;  %415 = vst [vmem:[#allocation3 + $0x68] sm:$0xff] %v383_v6  ;;  %v1146_v16 = vmul.f32 %v854_v9, %v1083_v58  ;;  %v286_v17 = vmul.f32 1.442695, %v236_v7  ;;  %v208_v18 = vmul.f32 %v176_v8, %v176_v8 }
  0xa2   :  { %v184_v19 = vsub.f32 %v1073_v52, %v1105_v62  ;;  %v858_v20 = vpop.eup %857  ;;  %422 = vst [vmem:[#allocation3 + $0xa0] sm:$0xff] %v1141_v11  ;;  %v1152_v21 = vmul.f32 %v856_v15, %v1087_v60  ;;  %v278_v22 = vmul.f32 1.442695, %v232_v12  ;;  %v302_v45 = vmul.f32 1.442695, %v244_v13 }
  0xa3   :  { %v189_v10 = vmul.f32 %v157_v14, %v157_v14  ;;  %v860_v23 = vpop.eup %859  ;;  %419 = vst [vmem:[#allocation3 + $0x88] sm:$0xff] %v1146_v16  ;;  %v1156_v24 = vmul.f32 %v858_v20, %v1085_v59  ;;  %871 = vpow2.f32 %v286_v17  ;;  %v240_v25 = vsub.f32 0.0, %v208_v18 }
  0xa4   :  { %v216_v26 = vmul.f32 %v184_v19, %v184_v19  ;;  %v862_v27 = vpop.eup %861  ;;  %426 = vst [vmem:[#allocation3 + $0xc0] sm:$0xff] %v1152_v21  ;;  %v1160_v62 = vmul.f32 %v860_v23, %v1089_v61  ;;  %873 = vpow2.f32 %v278_v22  ;;  %v165_v29 = vsub.f32 %v1063_v47, %v1131_v57 }
  0xa5   :  { %v221_v28 = vsub.f32 0.0, %v189_v10  ;;  %490 = vadd.xlane.f32.xlu1 %v1119_v31  ;;  %484 = vadd.xlane.f32.xlu0 %v379_v44  ;;  %423 = vst [vmem:[#allocation3 + $0xa8] sm:$0xff] %v1156_v24  ;;  %v1167_v30 = vmul.f32 %v862_v27, %v1087_v60  ;;  %875 = vpow2.f32 %v302_v45  ;;  %v294_v32 = vmul.f32 1.442695, %v240_v25 }
  0xa6   :  { %v248_v33 = vsub.f32 0.0, %v216_v26  ;;  %v864_v34 = vpop.eup %863  ;;  %430 = vst [vmem:[#allocation3 + $0xe0] sm:$0xff] %v1160_v62  ;;  %v197_v36 = vmul.f32 %v165_v29, %v165_v29  ;;  %v161_v37 = vsub.f32 %v1061_v46, %v1131_v57  ;;  %v173_v47 = vsub.f32 %v1067_v49, %v1131_v57 }
  0xa7   :  { %v256_v35 = vmul.f32 1.442695, %v221_v28  ;;  %v866_v31 = vpop.eup %865  ;;  %427 = vst [vmem:[#allocation3 + $0xc8] sm:$0xff] %v1167_v30  ;;  %v1176_v38 = vmul.f32 %v864_v34, %v1075_v53  ;;  %877 = vpow2.f32 %v294_v32  ;;  %v169_v40 = vsub.f32 %v1065_v48, %v1131_v57 }
  0xa8   :  { %v310_v39 = vmul.f32 1.442695, %v248_v33  ;;  %v868_v41 = vpop.eup %867  ;;  %v1181_v42 = vmul.f32 %v866_v31, %v1089_v61  ;;  %v229_v46 = vsub.f32 0.0, %v197_v36  ;;  %v193_v43 = vmul.f32 %v161_v37, %v161_v37 }
  0xa9   :  { %879 = vpow2.f32 %v256_v35  ;;  %v870_v44 = vpop.eup %869  ;;  %498 = vadd.xlane.f32.xlu1 %v1134_v2  ;;  %492 = vadd.xlane.f32.xlu0 %v383_v6  ;;  %404 = vst [vmem:[#allocation3 + $0x10] sm:$0xff] %v1176_v38  ;;  %v1186_v49 = vmul.f32 %v868_v41, %v1079_v55  ;;  %v205_v63 = vmul.f32 %v173_v47, %v173_v47 }
  0xaa   :  { %881 = vpow2.f32 %v310_v39  ;;  %v201_v0 = vmul.f32 %v169_v40, %v169_v40  ;;  %431 = vst [vmem:[#allocation3 + $0xe8] sm:$0xff] %v1181_v42  ;;  %v1190_v48 = vmul.f32 %v870_v44, %v1077_v54  ;;  %v272_v1 = vmul.f32 1.442695, %v229_v46 }
  0xab   :  { %v225_v3 = vsub.f32 0.0, %v193_v43  ;;  %v181_v4 = vsub.f32 %v1071_v51, %v1131_v57  ;;  %412 = vst [vmem:[#allocation3 + $0x50] sm:$0xff] %v1186_v49  ;;  %v237_v2 = vsub.f32 0.0, %v205_v63  ;;  %v177_v6 = vsub.f32 %v1069_v50, %v1131_v57 }
  0xac   :  { %v233_v5 = vsub.f32 0.0, %v201_v0  ;;  %v185_v7 = vsub.f32 %v1073_v52, %v1131_v57  ;;  %408 = vst [vmem:[#allocation3 + $0x30] sm:$0xff] %v1190_v48  ;;  %883 = vpow2.f32 %v272_v1 }
  0xad   :  { %v264_v8 = vmul.f32 1.442695, %v225_v3  ;;  %v213_v9 = vmul.f32 %v181_v4, %v181_v4  ;;  %v872_v12 = vpop.eup %871  ;;  %506 = vadd.xlane.f32.xlu1 %v1141_v11  ;;  %500 = vadd.xlane.f32.xlu0 %v1146_v16  ;;  %v288_v51 = vmul.f32 1.442695, %v237_v2  ;;  %v209_v14 = vmul.f32 %v177_v6, %v177_v6 }
  0xae   :  { %v280_v13 = vmul.f32 1.442695, %v233_v5  ;;  %v217_v15 = vmul.f32 %v185_v7, %v185_v7  ;;  %v874_v17 = vpop.eup %873  ;;  %v388_v50 = vmul.f32 %v872_v12, %v1083_v58 }
  0xaf   :  { %885 = vpow2.f32 %v264_v8  ;;  %v245_v18 = vsub.f32 0.0, %v213_v9  ;;  %v876_v52 = vpop.eup %875  ;;  %v384_v57 = vmul.f32 %v874_v17, %v1081_v56  ;;  %v241_v19 = vsub.f32 0.0, %v209_v14 }
  0xb0   :  { %887 = vpow2.f32 %v288_v51  ;;  %v249_v20 = vsub.f32 0.0, %v217_v15  ;;  %420 = vst [vmem:[#allocation3 + $0x90] sm:$0xff] %v388_v50  ;;  %v396_v11 = vmul.f32 %v876_v52, %v1087_v60 }
  0xb1   :  { %889 = vpow2.f32 %v280_v13  ;;  %v304_v16 = vmul.f32 1.442695, %v245_v18  ;;  %v878_v22 = vpop.eup %877  ;;  %514 = vadd.xlane.f32.xlu1 %v1152_v21  ;;  %508 = vadd.xlane.f32.xlu0 %v1156_v24  ;;  %416 = vst [vmem:[#allocation3 + $0x70] sm:$0xff] %v384_v57  ;;  %v296_v45 = vmul.f32 1.442695, %v241_v19 }
  0xb2   :  { %v312_v10 = vmul.f32 1.442695, %v249_v20  ;;  %428 = vst [vmem:[#allocation3 + $0xd0] sm:$0xff] %v396_v11  ;;  %v392_v25 = vmul.f32 %v878_v22, %v1085_v59 }
  0xb3   :  { %v880_v23 = vpop.eup %879  ;;  %891 = vpow2.f32 %v304_v16 }
  0xb4   :  { %v882_v26 = vpop.eup %881  ;;  %v373_v27 = vmul.f32 %v880_v23, %v1075_v53  ;;  %893 = vpow2.f32 %v296_v45  ;;  %424 = vst [vmem:[#allocation3 + $0xb0] sm:$0xff] %v392_v25 }
  0xb5   :  { %v400_v28 = vmul.f32 %v882_v26, %v1089_v61  ;;  %895 = vpow2.f32 %v312_v10  ;;  %522 = vadd.xlane.f32.xlu1 %v1160_v62  ;;  %516 = vadd.xlane.f32.xlu0 %v1167_v30 }
  0xb6   :  { %405 = vst [vmem:[#allocation3 + $0x18] sm:$0xff] %v373_v27  ;;  %v884_v21 = vpop.eup %883 }
  0xb7   :  { %432 = vst [vmem:[#allocation3 + $0xf0] sm:$0xff] %v400_v28  ;;  %v381_v24 = vmul.f32 %v884_v21, %v1079_v55 }
  0xb9   :  { %v886_v29 = vpop.eup %885  ;;  %470 = vadd.xlane.f32.xlu1 %v1176_v38  ;;  %524 = vadd.xlane.f32.xlu0 %v1181_v42  ;;  %413 = vst [vmem:[#allocation3 + $0x58] sm:$0xff] %v381_v24 }
  0xba   :  { %v888_v32 = vpop.eup %887  ;;  %v377_v53 = vmul.f32 %v886_v29, %v1077_v54 }
  0xbb   :  { %v890_v33 = vpop.eup %889  ;;  %v389_v34 = vmul.f32 %v888_v32, %v1083_v58 }
  0xbc   :  { %409 = vst [vmem:[#allocation3 + $0x38] sm:$0xff] %v377_v53  ;;  %v385_v62 = vmul.f32 %v890_v33, %v1081_v56 }
  0xbd   :  { %v892_v30 = vpop.eup %891  ;;  %421 = vst [vmem:[#allocation3 + $0x98] sm:$0xff] %v389_v34  ;;  %486 = vadd.xlane.f32.xlu1 %v1186_v49  ;;  %478 = vadd.xlane.f32.xlu0 %v1190_v48 }
  0xbe   :  { %v894_v35 = vpop.eup %893  ;;  %417 = vst [vmem:[#allocation3 + $0x78] sm:$0xff] %v385_v62  ;;  %v397_v55 = vmul.f32 %v892_v30, %v1087_v60 }
  0xbf   :  { %v896_v36 = vpop.eup %895  ;;  %v393_v37 = vmul.f32 %v894_v35, %v1085_v59 }
  0xc0   :  { %429 = vst [vmem:[#allocation3 + $0xd8] sm:$0xff] %v397_v55  ;;  %v401_v54 = vmul.f32 %v896_v36, %v1089_v61 }
  0xc1   :  { %425 = vst [vmem:[#allocation3 + $0xb8] sm:$0xff] %v393_v37  ;;  %502 = vadd.xlane.f32.xlu1 %v388_v50  ;;  %494 = vadd.xlane.f32.xlu0 %v384_v57 }
  0xc2   :  { %433 = vst [vmem:[#allocation3 + $0xf8] sm:$0xff] %v401_v54 }
  0xc5   :  { %518 = vadd.xlane.f32.xlu1 %v396_v11  ;;  %510 = vadd.xlane.f32.xlu0 %v392_v25 }
  0xc9   :  { %472 = vadd.xlane.f32.xlu1 %v373_v27  ;;  %526 = vadd.xlane.f32.xlu0 %v400_v28 }
  0xcd   :  { %488 = vadd.xlane.f32.xlu1 %v381_v24  ;;  %480 = vadd.xlane.f32.xlu0 %v377_v53 }
  0xd1   :  { %504 = vadd.xlane.f32.xlu1 %v389_v34  ;;  %496 = vadd.xlane.f32.xlu0 %v385_v62 }
  0xd5   :  { %520 = vadd.xlane.f32.xlu1 %v397_v55  ;;  %512 = vadd.xlane.f32.xlu0 %v393_v37 }
  0xd9   :  { %528 = vadd.xlane.f32.xlu0 %v401_v54 }
  0xda   :  { %924 = shalt.err (!%p921_p4)
}
  0xdb   :  { %s925_s30 = scalar_lea.hbm %s1559_s4, 4096 }
  0xdc   :  { %p926_p5 = scmp.ne.s32.totalorder %s1559_s4, %s925_s30  ;;  %p929_p6 = scmp.lt.u32.totalorder %s925_s30, %s1559_s4 }
  0xde   :  { %p931_p7 = pnand %p929_p6, %p926_p5 }
  0xe0   :  { %934 = shalt.err (!%p931_p7)
}
  0xe1   :  { %s940_s9 = smov 128   ;;  %s941_s10 = smov 8   ;;  %v434_v56 = vld [vmem:[#allocation2] sm:$0xff]  ;;  %v435_v60 = vld [vmem:[#allocation2 + $0x8] sm:$0xff]  ;;  %v436_v23 = vld [vmem:[#allocation2 + $0x10] sm:$0xff] }
  0xe2   :  { %819 = dma.vmem_to_hbm [thread:$0]  %s814_s26, 4096, %s1559_s4, [#allocation4], %s940_s9, %s940_s9, %s941_s10   ;;  %v438_v61 = vld [vmem:[#allocation2 + $0x20] sm:$0xff]  ;;  %v439_v41 = vld [vmem:[#allocation2 + $0x28] sm:$0xff]  ;;  %v444_v24 = vld [vmem:[#allocation2 + $0x50] sm:$0xff] }
  0xe3   :  { %v442_v40 = vld [vmem:[#allocation2 + $0x40] sm:$0xff]  ;;  %v443_v63 = vld [vmem:[#allocation2 + $0x48] sm:$0xff]  ;;  %v440_v29 = vld [vmem:[#allocation2 + $0x30] sm:$0xff] }
  0xe4   :  { %v446_v49 = vld [vmem:[#allocation2 + $0x60] sm:$0xff]  ;;  %v447_v2 = vld [vmem:[#allocation2 + $0x68] sm:$0xff]  ;;  %v452_v62 = vld [vmem:[#allocation2 + $0x90] sm:$0xff] }
  0xe5   :  { %v450_v4 = vld [vmem:[#allocation2 + $0x80] sm:$0xff]  ;;  %v451_v12 = vld [vmem:[#allocation2 + $0x88] sm:$0xff]  ;;  %v448_v30 = vld [vmem:[#allocation2 + $0x70] sm:$0xff] }
  0xe6   :  { %v454_v9 = vld [vmem:[#allocation2 + $0xa0] sm:$0xff]  ;;  %v455_v50 = vld [vmem:[#allocation2 + $0xa8] sm:$0xff]  ;;  %v460_v54 = vld [vmem:[#allocation2 + $0xd0] sm:$0xff] }
  0xe7   :  { %v458_v17 = vld [vmem:[#allocation2 + $0xc0] sm:$0xff]  ;;  %v459_v11 = vld [vmem:[#allocation2 + $0xc8] sm:$0xff] }
  0xe8   :  { %v462_v20 = vld [vmem:[#allocation2 + $0xe0] sm:$0xff]  ;;  %v463_v25 = vld [vmem:[#allocation2 + $0xe8] sm:$0xff] }
 0x126   :  { %v467_v58 = vpop.xlane.xlu0 %466 }
 0x127   :  { %v530_v59 = vadd.f32 %v467_v58, %v434_v56  ;;  %v456_v56 = vld [vmem:[#allocation2 + $0xb0] sm:$0xff] }
 0x129   :  { %563 = vst.msk [vmem:[#allocation2] sm:$0xff] %vm41_vm0, %v530_v59 }
 0x12a   :  { %v469_v47 = vpop.xlane.xlu1 %468  ;;  %v475_v31 = vpop.xlane.xlu0 %474 }
 0x12b   :  { %v531_v38 = vadd.f32 %v469_v47, %v435_v60  ;;  %v534_v39 = vadd.f32 %v475_v31, %v438_v61  ;;  %v437_v47 = vld [vmem:[#allocation2 + $0x18] sm:$0xff]  ;;  %v464_v31 = vld [vmem:[#allocation2 + $0xf0] sm:$0xff] }
 0x12d   :  { %564 = vst.msk [vmem:[#allocation2 + $0x8] sm:$0xff] %vm41_vm0, %v531_v38  ;;  %567 = vst.msk [vmem:[#allocation2 + $0x20] sm:$0xff] %vm41_vm0, %v534_v39 }
 0x12e   :  { %v483_v42 = vpop.xlane.xlu1 %482  ;;  %v477_v46 = vpop.xlane.xlu0 %476 }
 0x12f   :  { %v538_v43 = vadd.f32 %v483_v42, %v442_v40  ;;  %v535_v44 = vadd.f32 %v477_v46, %v439_v41  ;;  %v445_v42 = vld [vmem:[#allocation2 + $0x58] sm:$0xff] }
 0x131   :  { %571 = vst.msk [vmem:[#allocation2 + $0x40] sm:$0xff] %vm41_vm0, %v538_v43  ;;  %568 = vst.msk [vmem:[#allocation2 + $0x28] sm:$0xff] %vm41_vm0, %v535_v44  ;;  %v441_v44 = vld [vmem:[#allocation2 + $0x38] sm:$0xff] }
 0x132   :  { %v491_v0 = vpop.xlane.xlu1 %490  ;;  %v485_v48 = vpop.xlane.xlu0 %484 }
 0x133   :  { %v542_v1 = vadd.f32 %v491_v0, %v446_v49  ;;  %v539_v3 = vadd.f32 %v485_v48, %v443_v63  ;;  %v1262_v49 = vld [vmem:[#allocation2] sm:$0xff] }
 0x134   :  { %v1258_v46 = vld [vmem:[#allocation2 + $0x8] sm:$0xff]  ;;  %v1266_v63 = vld [vmem:[#allocation2 + $0x20] sm:$0xff] }
 0x135   :  { %575 = vst.msk [vmem:[#allocation2 + $0x60] sm:$0xff] %vm41_vm0, %v542_v1  ;;  %572 = vst.msk [vmem:[#allocation2 + $0x48] sm:$0xff] %vm41_vm0, %v539_v3 }
 0x136   :  { %v499_v5 = vpop.xlane.xlu1 %498  ;;  %v493_v6 = vpop.xlane.xlu0 %492 }
 0x137   :  { %v546_v7 = vadd.f32 %v499_v5, %v450_v4  ;;  %v543_v8 = vadd.f32 %v493_v6, %v447_v2  ;;  %v631_v4 = vsel %vm41_vm0, %v1258_v46, 0.0 }
 0x138   :  { %v1260_v43 = vld [vmem:[#allocation2 + $0x28] sm:$0xff]  ;;  %v1274_v2 = vld [vmem:[#allocation2 + $0x40] sm:$0xff] }
 0x139   :  { %579 = vst.msk [vmem:[#allocation2 + $0x80] sm:$0xff] %vm41_vm0, %v546_v7  ;;  %576 = vst.msk [vmem:[#allocation2 + $0x68] sm:$0xff] %vm41_vm0, %v543_v8  ;;  %v644_v5 = vsel %vm41_vm0, %v1260_v43, 0.0  ;;  %v453_v8 = vld [vmem:[#allocation2 + $0x98] sm:$0xff] }
 0x13a   :  { %v507_v51 = vpop.xlane.xlu1 %506  ;;  %v501_v13 = vpop.xlane.xlu0 %500 }
 0x13b   :  { %v550_v14 = vadd.f32 %v507_v51, %v454_v9  ;;  %v547_v15 = vadd.f32 %v501_v13, %v451_v12  ;;  %v449_v51 = vld [vmem:[#allocation2 + $0x78] sm:$0xff]  ;;  %v630_v13 = vsel %vm41_vm0, %v1262_v49, 0.0 }
 0x13c   :  { %v1268_v0 = vld [vmem:[#allocation2 + $0x48] sm:$0xff] }
 0x13d   :  { %583 = vst.msk [vmem:[#allocation2 + $0xa0] sm:$0xff] %vm41_vm0, %v550_v14  ;;  %580 = vst.msk [vmem:[#allocation2 + $0x88] sm:$0xff] %vm41_vm0, %v547_v15  ;;  %v643_v14 = vsel %vm41_vm0, %v1266_v63, 0.0  ;;  %v1286_v15 = vld [vmem:[#allocation2 + $0x60] sm:$0xff] }
 0x13e   :  { %v515_v18 = vpop.xlane.xlu1 %514  ;;  %v509_v52 = vpop.xlane.xlu0 %508 }
 0x13f   :  { %v554_v57 = vadd.f32 %v515_v18, %v458_v17  ;;  %v551_v19 = vadd.f32 %v509_v52, %v455_v50  ;;  %v657_v17 = vsel %vm41_vm0, %v1268_v0, 0.0  ;;  %v632_v52 = vadd.f32 %v631_v4, %v630_v13 }
 0x140   :  { %v1278_v9 = vld [vmem:[#allocation2 + $0x68] sm:$0xff] }
 0x141   :  { %587 = vst.msk [vmem:[#allocation2 + $0xc0] sm:$0xff] %vm41_vm0, %v554_v57  ;;  %584 = vst.msk [vmem:[#allocation2 + $0xa8] sm:$0xff] %vm41_vm0, %v551_v19  ;;  %v656_v57 = vsel %vm41_vm0, %v1274_v2, 0.0  ;;  %v645_v19 = vadd.f32 %v644_v5, %v643_v14 }
 0x142   :  { %v523_v16 = vpop.xlane.xlu1 %522  ;;  %v517_v22 = vpop.xlane.xlu0 %516 }
 0x143   :  { %v558_v45 = vadd.f32 %v523_v16, %v462_v20  ;;  %v555_v10 = vadd.f32 %v517_v22, %v459_v11  ;;  %v1298_v20 = vld [vmem:[#allocation2 + $0x80] sm:$0xff] }
 0x144   :  { %v1280_v12 = vld [vmem:[#allocation2 + $0x88] sm:$0xff] }
 0x145   :  { %591 = vst.msk [vmem:[#allocation2 + $0xe0] sm:$0xff] %vm41_vm0, %v558_v45  ;;  %588 = vst.msk [vmem:[#allocation2 + $0xc8] sm:$0xff] %vm41_vm0, %v555_v10  ;;  %v670_v10 = vsel %vm41_vm0, %v1278_v9, 0.0 }
 0x146   :  { %v471_v26 = vpop.xlane.xlu1 %470  ;;  %v525_v27 = vpop.xlane.xlu0 %524 }
 0x147   :  { %v532_v28 = vadd.f32 %v471_v26, %v436_v23  ;;  %v559_v21 = vadd.f32 %v525_v27, %v463_v25  ;;  %v1306_v23 = vld [vmem:[#allocation2 + $0xa0] sm:$0xff]  ;;  %v683_v25 = vsel %vm41_vm0, %v1280_v12, 0.0 }
 0x148   :  { %v1290_v50 = vld [vmem:[#allocation2 + $0xa8] sm:$0xff] }
 0x149   :  { %565 = vst.msk [vmem:[#allocation2 + $0x10] sm:$0xff] %vm41_vm0, %v532_v28  ;;  %592 = vst.msk [vmem:[#allocation2 + $0xe8] sm:$0xff] %vm41_vm0, %v559_v21  ;;  %v461_v28 = vld [vmem:[#allocation2 + $0xd8] sm:$0xff]  ;;  %v669_v21 = vsel %vm41_vm0, %v1286_v15, 0.0 }
 0x14a   :  { %v487_v32 = vpop.xlane.xlu1 %486  ;;  %v479_v53 = vpop.xlane.xlu0 %478 }
 0x14b   :  { %v540_v33 = vadd.f32 %v487_v32, %v444_v24  ;;  %v536_v34 = vadd.f32 %v479_v53, %v440_v29  ;;  %v658_v24 = vadd.f32 %v657_v17, %v656_v57  ;;  %v1312_v29 = vld [vmem:[#allocation2 + $0xc0] sm:$0xff]  ;;  %v696_v32 = vsel %vm41_vm0, %v1290_v50, 0.0 }
 0x14d   :  { %573 = vst.msk [vmem:[#allocation2 + $0x50] sm:$0xff] %vm41_vm0, %v540_v33  ;;  %569 = vst.msk [vmem:[#allocation2 + $0x30] sm:$0xff] %vm41_vm0, %v536_v34  ;;  %v457_v34 = vld [vmem:[#allocation2 + $0xb8] sm:$0xff] }
 0x14e   :  { %v503_v35 = vpop.xlane.xlu1 %502  ;;  %v495_v55 = vpop.xlane.xlu0 %494 }
 0x14f   :  { %v548_v36 = vadd.f32 %v503_v35, %v452_v62  ;;  %v544_v37 = vadd.f32 %v495_v55, %v448_v30  ;;  %v682_v62 = vsel %vm41_vm0, %v1298_v20, 0.0  ;;  %v1320_v30 = vld [vmem:[#allocation2 + $0xc8] sm:$0xff] }
 0x150   :  { %v1270_v48 = vld [vmem:[#allocation2 + $0x10] sm:$0xff] }
 0x151   :  { %581 = vst.msk [vmem:[#allocation2 + $0x90] sm:$0xff] %vm41_vm0, %v548_v36  ;;  %577 = vst.msk [vmem:[#allocation2 + $0x70] sm:$0xff] %vm41_vm0, %v544_v37  ;;  %v633_v18 = vsel %vm41_vm0, %v1270_v48, 0.0  ;;  %v671_v37 = vadd.f32 %v670_v10, %v669_v21 }
 0x152   :  { %v519_v58 = vpop.xlane.xlu1 %518  ;;  %v511_v59 = vpop.xlane.xlu0 %510  ;;  %v634_v53 = vadd.f32 %v633_v18, %v632_v52 }
 0x153   :  { %v556_v60 = vadd.f32 %v519_v58, %v460_v54  ;;  %v552_v61 = vadd.f32 %v511_v59, %v456_v56  ;;  %v695_v54 = vsel %vm41_vm0, %v1306_v23, 0.0  ;;  %v684_v56 = vadd.f32 %v683_v25, %v682_v62  ;;  %v1332_v58 = vld [vmem:[#allocation2 + $0xe0] sm:$0xff] }
 0x154   :  { %v1300_v11 = vld [vmem:[#allocation2 + $0x50] sm:$0xff] }
 0x155   :  { %589 = vst.msk [vmem:[#allocation2 + $0xd0] sm:$0xff] %vm41_vm0, %v556_v60  ;;  %585 = vst.msk [vmem:[#allocation2 + $0xb0] sm:$0xff] %vm41_vm0, %v552_v61  ;;  %v1302_v16 = vld [vmem:[#allocation2 + $0x30] sm:$0xff]  ;;  %v659_v35 = vsel %vm41_vm0, %v1300_v11, 0.0 }
 0x156   :  { %v473_v38 = vpop.xlane.xlu1 %472  ;;  %v527_v39 = vpop.xlane.xlu0 %526  ;;  %v646_v55 = vsel %vm41_vm0, %v1302_v16, 0.0 }
 0x157   :  { %v533_v40 = vadd.f32 %v473_v38, %v437_v47  ;;  %v560_v41 = vadd.f32 %v527_v39, %v464_v31  ;;  %v708_v31 = vsel %vm41_vm0, %v1312_v29, 0.0  ;;  %v697_v38 = vadd.f32 %v696_v32, %v695_v54  ;;  %v1338_v39 = vld [vmem:[#allocation2 + $0xe8] sm:$0xff] }
 0x158   :  { %v1334_v59 = vld [vmem:[#allocation2 + $0x90] sm:$0xff]  ;;  %v647_v4 = vadd.f32 %v646_v55, %v645_v19  ;;  %v722_v25 = vsel %vm41_vm0, %v1338_v39, 0.0 }
 0x159   :  { %566 = vst.msk [vmem:[#allocation2 + $0x18] sm:$0xff] %vm41_vm0, %v533_v40  ;;  %593 = vst.msk [vmem:[#allocation2 + $0xf0] sm:$0xff] %vm41_vm0, %v560_v41  ;;  %v1340_v40 = vld [vmem:[#allocation2 + $0x70] sm:$0xff]  ;;  %v685_v13 = vsel %vm41_vm0, %v1334_v59, 0.0 }
 0x15a   :  { %v489_v1 = vpop.xlane.xlu1 %488  ;;  %v481_v3 = vpop.xlane.xlu0 %480  ;;  %v672_v18 = vsel %vm41_vm0, %v1340_v40, 0.0 }
 0x15b   :  { %v541_v6 = vadd.f32 %v489_v1, %v445_v42  ;;  %v537_v7 = vadd.f32 %v481_v3, %v441_v44  ;;  %v465_v44 = vld [vmem:[#allocation2 + $0xf8] sm:$0xff]  ;;  %v709_v1 = vsel %vm41_vm0, %v1320_v30, 0.0  ;;  %v660_v3 = vadd.f32 %v659_v35, %v658_v24 }
 0x15c   :  { %v1344_v5 = vld [vmem:[#allocation2 + $0xd0] sm:$0xff]  ;;  %v710_v10 = vadd.f32 %v709_v1, %v708_v31  ;;  %v673_v35 = vadd.f32 %v672_v18, %v671_v37 }
 0x15d   :  { %574 = vst.msk [vmem:[#allocation2 + $0x58] sm:$0xff] %vm41_vm0, %v541_v6  ;;  %570 = vst.msk [vmem:[#allocation2 + $0x38] sm:$0xff] %vm41_vm0, %v537_v7  ;;  %v1362_v52 = vld [vmem:[#allocation2 + $0xb0] sm:$0xff] }
 0x15e   :  { %v505_v22 = vpop.xlane.xlu1 %504  ;;  %v497_v45 = vpop.xlane.xlu0 %496  ;;  %v698_v55 = vsel %vm41_vm0, %v1362_v52, 0.0 }
 0x15f   :  { %v549_v26 = vadd.f32 %v505_v22, %v453_v8  ;;  %v545_v27 = vadd.f32 %v497_v45, %v449_v51  ;;  %v721_v51 = vsel %vm41_vm0, %v1332_v58, 0.0 }
 0x160   :  { %v1316_v33 = vld [vmem:[#allocation2 + $0x18] sm:$0xff]  ;;  %v1368_v24 = vld [vmem:[#allocation2 + $0xf0] sm:$0xff]  ;;  %v723_v31 = vadd.f32 %v722_v25, %v721_v51 }
 0x161   :  { %v635_v36 = vsel %vm41_vm0, %v1316_v33, 0.0  ;;  %582 = vst.msk [vmem:[#allocation2 + $0x98] sm:$0xff] %vm41_vm0, %v549_v26  ;;  %578 = vst.msk [vmem:[#allocation2 + $0x78] sm:$0xff] %vm41_vm0, %v545_v27  ;;  %v711_v26 = vsel %vm41_vm0, %v1344_v5, 0.0  ;;  %v724_v37 = vsel %vm41_vm0, %v1368_v24, 0.0 }
 0x162   :  { %v636_v60 = vadd.f32 %v635_v36, %v634_v53  ;;  %v521_v61 = vpop.xlane.xlu1 %520  ;;  %v513_v47 = vpop.xlane.xlu0 %512 }
 0x163   :  { %v557_v41 = vadd.f32 %v521_v61, %v461_v28  ;;  %v553_v42 = vadd.f32 %v513_v47, %v457_v34  ;;  %v686_v28 = vadd.f32 %v685_v13, %v684_v56 }
 0x164   :  { %v637_v6 = vrot.slane %v636_v60, 4  ;;  %v1346_v7 = vld [vmem:[#allocation2 + $0x58] sm:$0xff] }
 0x165   :  { %v1348_v8 = vld [vmem:[#allocation2 + $0x38] sm:$0xff]  ;;  %v661_v14 = vsel %vm41_vm0, %v1346_v7, 0.0  ;;  %590 = vst.msk [vmem:[#allocation2 + $0xd8] sm:$0xff] %vm41_vm0, %v557_v41  ;;  %586 = vst.msk [vmem:[#allocation2 + $0xb8] sm:$0xff] %vm41_vm0, %v553_v42  ;;  %v712_v41 = vadd.f32 %v711_v26, %v710_v10  ;;  %v725_v10 = vadd.f32 %v724_v37, %v723_v31 }
 0x166   :  { %v648_v17 = vsel %vm41_vm0, %v1348_v8, 0.0  ;;  %v638_v57 = vadd.f32 %v637_v6, %v636_v60  ;;  %v662_v19 = vadd.f32 %v661_v14, %v660_v3  ;;  %v529_v45 = vpop.xlane.xlu0 %528  ;;  %v699_v14 = vadd.f32 %v698_v55, %v697_v38 }
 0x167   :  { %v649_v22 = vadd.f32 %v648_v17, %v647_v4  ;;  %v561_v27 = vadd.f32 %v529_v45, %v465_v44 }
 0x168   :  { %v639_v21 = vrot.slane %v638_v57, 2  ;;  %v663_v32 = vrot.slane %v662_v19, 4  ;;  %v1370_v34 = vld [vmem:[#allocation2 + $0x98] sm:$0xff] }
 0x169   :  { %v650_v53 = vrot.slane %v649_v22, 4  ;;  %v1372_v62 = vld [vmem:[#allocation2 + $0x78] sm:$0xff]  ;;  %v687_v36 = vsel %vm41_vm0, %v1370_v34, 0.0  ;;  %594 = vst.msk [vmem:[#allocation2 + $0xf8] sm:$0xff] %vm41_vm0, %v561_v27 }
 0x16a   :  { %v674_v54 = vsel %vm41_vm0, %v1372_v62, 0.0  ;;  %v640_v56 = vadd.f32 %v639_v21, %v638_v57  ;;  %v664_v60 = vadd.f32 %v663_v32, %v662_v19  ;;  %v688_v47 = vadd.f32 %v687_v36, %v686_v28 }
 0x16b   :  { %v651_v61 = vadd.f32 %v650_v53, %v649_v22  ;;  %v675_v42 = vadd.f32 %v674_v54, %v673_v35 }
 0x16c   :  { %v641_v44 = vrot.slane %v640_v56, 1  ;;  %v665_v1 = vrot.slane %v664_v60, 2  ;;  %v689_v4 = vrot.slane %v688_v47, 4  ;;  %v1383_v6 = vld [vmem:[#allocation2 + $0xd8] sm:$0xff] }
 0x16d   :  { %v652_v3 = vrot.slane %v651_v61, 2  ;;  %v1385_v13 = vld [vmem:[#allocation2 + $0xb8] sm:$0xff]  ;;  %v676_v17 = vrot.slane %v675_v42, 4  ;;  %v713_v18 = vsel %vm41_vm0, %v1383_v6, 0.0 }
 0x16e   :  { %v700_v51 = vsel %vm41_vm0, %v1385_v13, 0.0  ;;  %v642_v57 = vadd.f32 %v641_v44, %v640_v56  ;;  %v666_v19 = vadd.f32 %v665_v1, %v664_v60  ;;  %v690_v45 = vadd.f32 %v689_v4, %v688_v47 }
 0x16f   :  { %v653_v22 = vadd.f32 %v652_v3, %v651_v61  ;;  %v677_v25 = vadd.f32 %v676_v17, %v675_v42  ;;  %v714_v26 = vadd.f32 %v713_v18, %v712_v41  ;;  %v701_v27 = vadd.f32 %v700_v51, %v699_v14 }
 0x170   :  { %897 = vrcp.f32 %v642_v57  ;;  %v667_v28 = vrot.slane %v666_v19, 1  ;;  %v691_v32 = vrot.slane %v690_v45, 2  ;;  %v1391_v38 = vld [vmem:[#allocation2 + $0xf8] sm:$0xff] }
 0x171   :  { %v654_v21 = vrot.slane %v653_v22, 1  ;;  %v678_v53 = vrot.slane %v677_v25, 2  ;;  %v715_v35 = vrot.slane %v714_v26, 4  ;;  %v702_v55 = vrot.slane %v701_v27, 4 }
 0x172   :  { %v726_v36 = vsel %vm41_vm0, %v1391_v38, 0.0  ;;  %v668_v54 = vadd.f32 %v667_v28, %v666_v19  ;;  %v692_v60 = vadd.f32 %v691_v32, %v690_v45 }
 0x173   :  { %v655_v56 = vadd.f32 %v654_v21, %v653_v22  ;;  %v727_v61 = vadd.f32 %v726_v36, %v725_v10  ;;  %v679_v47 = vadd.f32 %v678_v53, %v677_v25  ;;  %v716_v31 = vadd.f32 %v715_v35, %v714_v26 }
 0x174   :  { %v703_v41 = vadd.f32 %v702_v55, %v701_v27  ;;  %899 = vrcp.f32 %v668_v54  ;;  %v693_v37 = vrot.slane %v692_v60, 1 }
 0x175   :  { %v728_v42 = vrot.slane %v727_v61, 4  ;;  %901 = vrcp.f32 %v655_v56  ;;  %v680_v44 = vrot.slane %v679_v47, 1  ;;  %v717_v1 = vrot.slane %v716_v31, 2 }
 0x176   :  { %v704_v3 = vrot.slane %v703_v41, 2  ;;  %v694_v4 = vadd.f32 %v693_v37, %v692_v60 }
 0x177   :  { %v729_v14 = vadd.f32 %v728_v42, %v727_v61  ;;  %v681_v17 = vadd.f32 %v680_v44, %v679_v47  ;;  %v718_v18 = vadd.f32 %v717_v1, %v716_v31 }
 0x178   :  { %v705_v51 = vadd.f32 %v704_v3, %v703_v41  ;;  %903 = vrcp.f32 %v694_v4 }
 0x179   :  { %v730_v57 = vrot.slane %v729_v14, 2  ;;  %905 = vrcp.f32 %v681_v17  ;;  %v719_v19 = vrot.slane %v718_v18, 1 }
 0x17a   :  { %v706_v22 = vrot.slane %v705_v51, 1  ;;  %v898_v45 = vpop.eup %897 }
 0x17b   :  { %v731_v10 = vadd.f32 %v730_v57, %v729_v14  ;;  %v735_v25 = vmul.f32 %v898_v45, %v1262_v49  ;;  %v736_v26 = vmul.f32 %v898_v45, %v1258_v46  ;;  %v737_v27 = vmul.f32 %v898_v45, %v1270_v48 }
 0x17c   :  { %v738_v28 = vmul.f32 %v898_v45, %v1316_v33  ;;  %v720_v21 = vadd.f32 %v719_v19, %v718_v18  ;;  %v707_v46 = vadd.f32 %v706_v22, %v705_v51 }
 0x17d   :  { %v732_v32 = vrot.slane %v731_v10, 1  ;;  %774 = vst.msk [vmem:[%s1558_s3] sm:$0xff] %vm41_vm0, %v735_v25  ;;  %775 = vst.msk [vmem:[%s1558_s3 + $0x8] sm:$0xff] %vm41_vm0, %v736_v26 }
 0x17e   :  { %776 = vst.msk [vmem:[%s1558_s3 + $0x10] sm:$0xff] %vm41_vm0, %v737_v27  ;;  %777 = vst.msk [vmem:[%s1558_s3 + $0x18] sm:$0xff] %vm41_vm0, %v738_v28  ;;  %v900_v49 = vpop.eup %899  ;;  %907 = vrcp.f32 %v720_v21 }
 0x17f   :  { %v733_v48 = vadd.f32 %v732_v32, %v731_v10  ;;  %v902_v33 = vpop.eup %901  ;;  %v745_v53 = vmul.f32 %v900_v49, %v1274_v2  ;;  %v746_v35 = vmul.f32 %v900_v49, %v1268_v0  ;;  %v747_v55 = vmul.f32 %v900_v49, %v1300_v11 }
 0x180   :  { %v748_v36 = vmul.f32 %v900_v49, %v1346_v7  ;;  %v740_v54 = vmul.f32 %v902_v33, %v1266_v63  ;;  %v741_v56 = vmul.f32 %v902_v33, %v1260_v43  ;;  %v742_v60 = vmul.f32 %v902_v33, %v1302_v16 }
 0x181   :  { %v743_v61 = vmul.f32 %v902_v33, %v1348_v8  ;;  %782 = vst.msk [vmem:[%s1558_s3 + $0x40] sm:$0xff] %vm41_vm0, %v745_v53  ;;  %783 = vst.msk [vmem:[%s1558_s3 + $0x48] sm:$0xff] %vm41_vm0, %v746_v35  ;;  %909 = vrcp.f32 %v707_v46 }
 0x182   :  { %784 = vst.msk [vmem:[%s1558_s3 + $0x50] sm:$0xff] %vm41_vm0, %v747_v55  ;;  %785 = vst.msk [vmem:[%s1558_s3 + $0x58] sm:$0xff] %vm41_vm0, %v748_v36  ;;  %v904_v43 = vpop.eup %903  ;;  %911 = vrcp.f32 %v733_v48 }
 0x183   :  { %778 = vst.msk [vmem:[%s1558_s3 + $0x20] sm:$0xff] %vm41_vm0, %v740_v54  ;;  %779 = vst.msk [vmem:[%s1558_s3 + $0x28] sm:$0xff] %vm41_vm0, %v741_v56  ;;  %v906_v63 = vpop.eup %905  ;;  %v755_v0 = vmul.f32 %v904_v43, %v1298_v20  ;;  %v756_v2 = vmul.f32 %v904_v43, %v1280_v12  ;;  %v757_v11 = vmul.f32 %v904_v43, %v1334_v59 }
 0x184   :  { %780 = vst.msk [vmem:[%s1558_s3 + $0x30] sm:$0xff] %vm41_vm0, %v742_v60  ;;  %781 = vst.msk [vmem:[%s1558_s3 + $0x38] sm:$0xff] %vm41_vm0, %v743_v61  ;;  %v758_v16 = vmul.f32 %v904_v43, %v1370_v34  ;;  %v750_v7 = vmul.f32 %v906_v63, %v1286_v15  ;;  %v751_v8 = vmul.f32 %v906_v63, %v1278_v9 }
 0x185   :  { %v752_v47 = vmul.f32 %v906_v63, %v1340_v40  ;;  %v753_v31 = vmul.f32 %v906_v63, %v1372_v62  ;;  %790 = vst.msk [vmem:[%s1558_s3 + $0x80] sm:$0xff] %vm41_vm0, %v755_v0  ;;  %791 = vst.msk [vmem:[%s1558_s3 + $0x88] sm:$0xff] %vm41_vm0, %v756_v2 }
 0x186   :  { %792 = vst.msk [vmem:[%s1558_s3 + $0x90] sm:$0xff] %vm41_vm0, %v757_v11  ;;  %793 = vst.msk [vmem:[%s1558_s3 + $0x98] sm:$0xff] %vm41_vm0, %v758_v16 }
 0x187   :  { %786 = vst.msk [vmem:[%s1558_s3 + $0x60] sm:$0xff] %vm41_vm0, %v750_v7  ;;  %787 = vst.msk [vmem:[%s1558_s3 + $0x68] sm:$0xff] %vm41_vm0, %v751_v8 }
 0x188   :  { %788 = vst.msk [vmem:[%s1558_s3 + $0x70] sm:$0xff] %vm41_vm0, %v752_v47  ;;  %789 = vst.msk [vmem:[%s1558_s3 + $0x78] sm:$0xff] %vm41_vm0, %v753_v31  ;;  %v908_v9 = vpop.eup %907 }
 0x189   :  { %v765_v12 = vmul.f32 %v908_v9, %v1312_v29  ;;  %v766_v15 = vmul.f32 %v908_v9, %v1320_v30  ;;  %v767_v20 = vmul.f32 %v908_v9, %v1344_v5  ;;  %v768_v59 = vmul.f32 %v908_v9, %v1383_v6 }
 0x18b   :  { %v910_v40 = vpop.eup %909  ;;  %798 = vst.msk [vmem:[%s1558_s3 + $0xc0] sm:$0xff] %vm41_vm0, %v765_v12  ;;  %799 = vst.msk [vmem:[%s1558_s3 + $0xc8] sm:$0xff] %vm41_vm0, %v766_v15 }
 0x18c   :  { %800 = vst.msk [vmem:[%s1558_s3 + $0xd0] sm:$0xff] %vm41_vm0, %v767_v20  ;;  %801 = vst.msk [vmem:[%s1558_s3 + $0xd8] sm:$0xff] %vm41_vm0, %v768_v59  ;;  %v912_v29 = vpop.eup %911  ;;  %v760_v30 = vmul.f32 %v910_v40, %v1306_v23  ;;  %v761_v5 = vmul.f32 %v910_v40, %v1290_v50  ;;  %v762_v34 = vmul.f32 %v910_v40, %v1362_v52 }
 0x18d   :  { %v763_v62 = vmul.f32 %v910_v40, %v1385_v13  ;;  %v770_v6 = vmul.f32 %v912_v29, %v1332_v58  ;;  %v771_v41 = vmul.f32 %v912_v29, %v1338_v39  ;;  %v772_v37 = vmul.f32 %v912_v29, %v1368_v24 }
 0x18e   :  { %v773_v42 = vmul.f32 %v912_v29, %v1391_v38  ;;  %794 = vst.msk [vmem:[%s1558_s3 + $0xa0] sm:$0xff] %vm41_vm0, %v760_v30  ;;  %795 = vst.msk [vmem:[%s1558_s3 + $0xa8] sm:$0xff] %vm41_vm0, %v761_v5 }
 0x18f   :  { %796 = vst.msk [vmem:[%s1558_s3 + $0xb0] sm:$0xff] %vm41_vm0, %v762_v34  ;;  %797 = vst.msk [vmem:[%s1558_s3 + $0xb8] sm:$0xff] %vm41_vm0, %v763_v62 }
 0x190   :  { %802 = vst.msk [vmem:[%s1558_s3 + $0xe0] sm:$0xff] %vm41_vm0, %v770_v6  ;;  %803 = vst.msk [vmem:[%s1558_s3 + $0xe8] sm:$0xff] %vm41_vm0, %v771_v41 }
 0x191   :  { %804 = vst.msk [vmem:[%s1558_s3 + $0xf0] sm:$0xff] %vm41_vm0, %v772_v37  ;;  %805 = vst.msk [vmem:[%s1558_s3 + $0xf8] sm:$0xff] %vm41_vm0, %v773_v42 }
 0x192   :  { %935 = dma.done.wait [#allocation4], 4096  }
 0x193   :  { %936 = vsyncadd [#allocation4], 4294963200 }
 0x194   :  { %825 = vsyncpa [#allocation4], 1 }

</bundles_post_ra>
